<compile_context>
chip_gen: v6e
topology: v6e:2x2x1
jax: 0.10.0
libtpu: 0.0.40
codegen_flags: <defaults>
</compile_context>

<pallas_src>
import functools

import jax
import jax.numpy as jnp
from jax.experimental import pallas as pl
from jax.experimental.pallas import tpu as pltpu

PATCH = 14
EPS = 1e-6                        # DINOv2 LayerNorm eps
VMEM_LIMIT = 32 * 1024 * 1024     # explicit scoped-VMEM budget (safe on v5e/v6e/v7x)


def _round_up(x, m):
    return (x + m - 1) // m * m


def _ln(v, g, b):
    """LayerNorm over the last axis, f32 internals."""
    mu = jnp.mean(v, axis=-1, keepdims=True)
    var = jnp.mean(jnp.square(v - mu), axis=-1, keepdims=True)
    return (v - mu) * jax.lax.rsqrt(var + EPS) * g + b


# ----------------------------------------------------------------------------
# Pallas kernels
# ----------------------------------------------------------------------------
def _embed_kernel(patches_ref, w_ref, b_ref, cls_ref, pos_ref, o_ref, *, n_patches):
    """Fused patch-embed matmul + CLS token + positional embedding.

    patches_ref: (1, SP, PD) f32; row 0 (CLS slot) and the tail pad rows are 0.
    w_ref: (PD, D) bf16; b/cls: (1, D) f32; pos: (SP, D) f32 (pad rows zero).
    """
    x = jnp.dot(patches_ref[0].astype(jnp.bfloat16), w_ref[...],
                preferred_element_type=jnp.float32) + b_ref[...]       # (SP, D)
    row = jax.lax.broadcasted_iota(jnp.int32, x.shape, 0)
    tok = jnp.where(row == 0, cls_ref[...],
                    jnp.where(row <= n_patches, x, 0.0))
    o_ref[0] = tok + pos_ref[...]


def _vit_kernel(x_ref,
                ln1g, ln1b, qkvw, qkvb, projw, projb, ls1,
                ln2g, ln2b, fc1w, fc1b, fc2w, fc2b, ls2,
                normg, normb,
                o_ref, res_ref,
                *, num_heads, head_dim, seq_valid, depth, n_tokens):
    """All transformer blocks fused over grid=(batch, depth).

    The residual token tensor stays resident in `res_ref` (VMEM scratch) across
    the depth axis; per-block weights arrive as (1, ...) slices of depth-stacked
    arrays (BlockSpec streams/double-buffers them).  The final LayerNorm, the
    patch-token slice and the (N, D) -> (D, N) permute are applied on the last
    depth step so tokens never round-trip to HBM between blocks.
    """
    di = pl.program_id(1)
    D = num_heads * head_dim

    @pl.when(di == 0)
    def _():
        res_ref[...] = x_ref[0]                    # load embeddings once per batch

    x = res_ref[...]                               # (SP, D) f32 residual
    SP = x.shape[0]

    # ---- attention branch (pre-LN, fused qkv, batched heads) ----
    h = _ln(x, ln1g[0], ln1b[0])
    qkv = jnp.dot(h.astype(jnp.bfloat16), qkvw[0],
                  preferred_element_type=jnp.float32) + qkvb[0]        # (SP, 3D)
    q = ((qkv[:, :D] * (head_dim ** -0.5))
         .reshape(SP, num_heads, head_dim).astype(jnp.bfloat16))
    k = qkv[:, D:2 * D].reshape(SP, num_heads, head_dim).astype(jnp.bfloat16)
    v = qkv[:, 2 * D:].reshape(SP, num_heads, head_dim).astype(jnp.bfloat16)

    # TODO(synk): full-sequence scores (H, SP, SP); for very long sequences a
    # flash-style query-tiled variant would bound this VMEM footprint.
    s = jnp.einsum("qhd,khd->hqk", q, k,
                   preferred_element_type=jnp.float32)                 # (H, SP, SP)
    key_idx = jax.lax.broadcasted_iota(jnp.int32, s.shape, 2)
    s = jnp.where(key_idx < seq_valid, s, -1e30)                       # mask pad keys
    s = s - jnp.max(s, axis=-1, keepdims=True)
    p = jnp.exp(s)
    p = p * pl.reciprocal(jnp.sum(p, axis=-1, keepdims=True), approx=True)
    o = jnp.einsum("hqk,khd->qhd", p.astype(jnp.bfloat16), v,
                   preferred_element_type=jnp.float32).reshape(SP, D)

    attn = jnp.dot(o.astype(jnp.bfloat16), projw[0],
                   preferred_element_type=jnp.float32) + projb[0]
    x1 = x + ls1[0] * attn                         # LayerScale + residual (f32)

    # ---- MLP branch ----
    h2 = _ln(x1, ln2g[0], ln2b[0])
    h2 = jnp.dot(h2.astype(jnp.bfloat16), fc1w[0],
                 preferred_element_type=jnp.float32) + fc1b[0]
    # TODO(synk): PyTorch nn.GELU() default is exact erf GELU; using the tanh
    # approximation for guaranteed Mosaic lowering.
    h2 = jax.nn.gelu(h2, approximate=True)
    h2 = jnp.dot(h2.astype(jnp.bfloat16), fc2w[0],
                 preferred_element_type=jnp.float32) + fc2b[0]
    x2 = x1 + ls2[0] * h2                          # LayerScale + residual (f32)

    res_ref[...] = x2                              # carry residual to next block

    @pl.when(di == depth - 1)
    def _():
        # Fused final LayerNorm + x_norm_patchtokens slice + (N,D)->(D,N) permute.
        y = _ln(x2, normg[...], normb[...])        # (SP, D)
        yt = jnp.transpose(y, (1, 0))              # (D, SP)
        o_ref[0] = yt[:, 1:1 + n_tokens]           # drop CLS + pad -> (D, N)


# ----------------------------------------------------------------------------
# pallas_call wrappers
# ----------------------------------------------------------------------------
def patch_embed(patches, w, b, cls, pos, *, n_patches):
    B, SP, PD = patches.shape
    D = w.shape[1]
    kern = functools.partial(_embed_kernel, n_patches=n_patches)
    return pl.pallas_call(
        kern,
        out_shape=jax.ShapeDtypeStruct((B, SP, D), jnp.float32),
        grid=(B,),
        in_specs=[
            pl.BlockSpec((1, SP, PD), lambda bi: (bi, 0, 0)),
            pl.BlockSpec((PD, D), lambda bi: (0, 0)),
            pl.BlockSpec((1, D), lambda bi: (0, 0)),
            pl.BlockSpec((1, D), lambda bi: (0, 0)),
            pl.BlockSpec((SP, D), lambda bi: (0, 0)),
        ],
        out_specs=pl.BlockSpec((1, SP, D), lambda bi: (bi, 0, 0)),
        compiler_params=pltpu.CompilerParams(
            dimension_semantics=("parallel",), vmem_limit_bytes=VMEM_LIMIT),
    )(patches, w, b, cls, pos)


def vit_blocks(x, blk, norm_g, norm_b, *, num_heads, seq_valid, n_tokens):
    """All transformer blocks + final LN + feature permute in one pallas_call."""
    B, SP, D = x.shape
    depth = blk["qkv_w"].shape[0]
    head_dim = D // num_heads

    kern = functools.partial(_vit_kernel, num_heads=num_heads, head_dim=head_dim,
                             seq_valid=seq_valid, depth=depth, n_tokens=n_tokens)

    stacked = (blk["ln1_g"], blk["ln1_b"], blk["qkv_w"], blk["qkv_b"],
               blk["proj_w"], blk["proj_b"], blk["ls1"],
               blk["ln2_g"], blk["ln2_b"], blk["fc1_w"], blk["fc1_b"],
               blk["fc2_w"], blk["fc2_b"], blk["ls2"])

    def blk_spec(a):
        # depth-stacked weight: stream one (1, ...) slice per depth step.
        return pl.BlockSpec((1,) + a.shape[1:],
                            lambda bi, di, _n=a.ndim - 1: (di,) + (0,) * _n)

    def rep_spec(a):
        # replicated (final-norm) parameter: same block every grid step.
        return pl.BlockSpec(a.shape, lambda bi, di, _n=a.ndim: (0,) * _n)

    return pl.pallas_call(
        kern,
        out_shape=jax.ShapeDtypeStruct((B, D, n_tokens), jnp.float32),
        grid=(B, depth),
        in_specs=[pl.BlockSpec((1, SP, D), lambda bi, di: (bi, 0, 0))]
        + [blk_spec(a) for a in stacked]
        + [rep_spec(norm_g), rep_spec(norm_b)],
        out_specs=pl.BlockSpec((1, D, n_tokens), lambda bi, di: (bi, 0, 0)),
        scratch_shapes=[pltpu.VMEM((SP, D), jnp.float32)],
        compiler_params=pltpu.CompilerParams(
            dimension_semantics=("parallel", "arbitrary"),
            vmem_limit_bytes=VMEM_LIMIT),
    )(x, *stacked, norm_g, norm_b)


# ----------------------------------------------------------------------------
# Model glue (reshapes / parameter setup in plain JAX)
# ----------------------------------------------------------------------------
def patchify(img):
    """NCHW image -> (B, num_patches, C*14*14) patches (== 14x14/14 conv unfold)."""
    B, C, H, W = img.shape
    gh, gw = H // PATCH, W // PATCH
    x = img.reshape(B, C, gh, PATCH, gw, PATCH)
    x = x.transpose(0, 2, 4, 1, 3, 5)          # (B, gh, gw, C, p, p)
    return x.reshape(B, gh * gw, C * PATCH * PATCH)


def init_params(key, *, dim, depth, num_heads, num_patches, in_chans=3):
    del num_heads  # head count only affects the kernel closure, not shapes
    keys = jax.random.split(key, 5)

    def nrm(k, shape, dtype=jnp.float32, scale=0.02):
        return (scale * jax.random.normal(k, shape, jnp.float32)).astype(dtype)

    seq_valid = num_patches + 1
    sp = _round_up(seq_valid, 8)               # sublane-aligned padded sequence
    hidden = 4 * dim

    pos = nrm(keys[3], (seq_valid, dim))
    pos = jnp.pad(pos, ((0, sp - seq_valid), (0, 0)))   # pad rows stay zero

    bk = jax.random.split(keys[4], 8)
    # Per-block parameters are stacked along a leading depth axis so the single
    # fused transformer pallas_call can stream them block by block.
    blocks = {
        "ln1_g": jnp.ones((depth, 1, dim), jnp.float32),
        "ln1_b": jnp.zeros((depth, 1, dim), jnp.float32),
        "qkv_w": nrm(bk[0], (depth, dim, 3 * dim), jnp.bfloat16),
        "qkv_b": nrm(bk[1], (depth, 1, 3 * dim)),
        "proj_w": nrm(bk[2], (depth, dim, dim), jnp.bfloat16),
        "proj_b": nrm(bk[3], (depth, 1, dim)),
        "ls1": jnp.full((depth, 1, dim), 1e-5, jnp.float32),   # LayerScale init
        "ln2_g": jnp.ones((depth, 1, dim), jnp.float32),
        "ln2_b": jnp.zeros((depth, 1, dim), jnp.float32),
        "fc1_w": nrm(bk[4], (depth, dim, hidden), jnp.bfloat16),
        "fc1_b": nrm(bk[5], (depth, 1, hidden)),
        "fc2_w": nrm(bk[6], (depth, hidden, dim), jnp.bfloat16),
        "fc2_b": nrm(bk[7], (depth, 1, dim)),
        "ls2": jnp.full((depth, 1, dim), 1e-5, jnp.float32),
    }

    return {
        "patch_w": nrm(keys[0], (in_chans * PATCH * PATCH, dim), jnp.bfloat16),
        "patch_b": nrm(keys[1], (1, dim)),
        "cls": nrm(keys[2], (1, dim)),
        "pos": pos,
        "norm_g": jnp.ones((1, dim), jnp.float32),
        "norm_b": jnp.zeros((1, dim), jnp.float32),
        "blocks": blocks,
    }


def dinov2_extractor_forward(img, params, *, num_heads):
    """Equivalent of Dinov2Extractor.forward: (B, 3, H, W) -> (B, D, H//14, W//14)."""
    B, C, H, W = img.shape
    gh, gw = H // PATCH, W // PATCH
    n_patches = gh * gw
    seq_valid = n_patches + 1
    sp = params["pos"].shape[0]
    D = params["patch_w"].shape[1]

    # patch unfold (XLA glue); pad so row 0 is the CLS slot and the tail rows
    # make the sequence a multiple of 8.
    patches = patchify(img)                                     # (B, NP, C*196)
    patches = jnp.pad(patches, ((0, 0), (1, sp - seq_valid), (0, 0)))

    # fused: patch-embed matmul + CLS token + positional embedding
    x = patch_embed(patches, params["patch_w"], params["patch_b"],
                    params["cls"], params["pos"], n_patches=n_patches)

    # fused: all transformer blocks + final LayerNorm + x_norm_patchtokens
    # slice + (B,N,D)->(B,D,N) permute (single pallas_call, grid=(B, depth))
    feats = vit_blocks(x, params["blocks"], params["norm_g"], params["norm_b"],
                       num_heads=num_heads, seq_valid=seq_valid,
                       n_tokens=n_patches)                      # (B, D, N)
    return feats.reshape(B, D, gh, gw)                          # (B, D, H//14, W//14)


# ----------------------------------------------------------------------------
if __name__ == "__main__":
    key = jax.random.PRNGKey(0)
    k_img, k_par = jax.random.split(key)

    B, C, H, W = 2, 3, 28, 28      # small, /14-divisible spatial size
    dim, depth, heads = 128, 2, 2  # tiny stand-in for dinov2_vits14

    img = jax.random.normal(k_img, (B, C, H, W), jnp.float32)
    params = init_params(
        k_par, dim=dim, depth=depth, num_heads=heads,
        num_patches=(H // PATCH) * (W // PATCH),
    )

    out = dinov2_extractor_forward(img, params, num_heads=heads)
    out = jax.block_until_ready(out)
    assert out.shape == (B, dim, H // PATCH, W // PATCH), out.shape
    assert bool(jnp.all(jnp.isfinite(out)))
    print("KERNEL_OK")
</pallas_src>

<mosaic_0001>
module attributes {stable_mosaic.version = 11 : i64} {
  func.func @_embed_kernel(%arg0: i32, %arg1: memref<1x8x588xf32, #tpu.memory_space<vmem>>, %arg2: memref<588x128xbf16, #tpu.memory_space<vmem>>, %arg3: memref<1x128xf32, #tpu.memory_space<vmem>>, %arg4: memref<1x128xf32, #tpu.memory_space<vmem>>, %arg5: memref<8x128xf32, #tpu.memory_space<vmem>>, %arg6: memref<1x8x128xf32, #tpu.memory_space<vmem>>) attributes {dimension_semantics = [#tpu.dimension_semantics<parallel>], iteration_bounds = array<i64: 2>, scalar_prefetch = 0 : i64, scratch_operands = 0 : i64, tpu.core_type = #tpu.core_type<tc>, window_params = [{transform_indices = @transform_0, window_bounds = array<i64: 1, 8, 588>}, {pipeline_mode = #tpu.pipeline_mode<synchronous>, transform_indices = @transform_1, window_bounds = array<i64: 588, 128>}, {pipeline_mode = #tpu.pipeline_mode<synchronous>, transform_indices = @transform_2, window_bounds = array<i64: 1, 128>}, {pipeline_mode = #tpu.pipeline_mode<synchronous>, transform_indices = @transform_3, window_bounds = array<i64: 1, 128>}, {pipeline_mode = #tpu.pipeline_mode<synchronous>, transform_indices = @transform_4, window_bounds = array<i64: 8, 128>}, {transform_indices = @transform_5, window_bounds = array<i64: 1, 8, 128>}]} {
    %c0 = arith.constant 0 : index
    %c0_0 = arith.constant 0 : index
    %c0_1 = arith.constant 0 : index
    %0 = vector.load %arg1[%c0, %c0_0, %c0_1] : memref<1x8x588xf32, #tpu.memory_space<vmem>>, vector<1x8x588xf32>
    %1 = vector.shape_cast %0 : vector<1x8x588xf32> to vector<8x588xf32>
    %2 = arith.truncf %1 : vector<8x588xf32> to vector<8x588xbf16>
    %c0_2 = arith.constant 0 : index
    %c0_3 = arith.constant 0 : index
    %3 = vector.load %arg2[%c0_2, %c0_3] : memref<588x128xbf16, #tpu.memory_space<vmem>>, vector<588x128xbf16>
    %cst = arith.constant dense<0.000000e+00> : vector<8x128xf32>
    %4 = tpu.matmul %2, %3, %cst {dimension_numbers = #tpu.dot_dimension_numbers<[1], [0], [0], [1], [0, 0, 1, 1], [], []>} : vector<8x588xbf16>, vector<588x128xbf16>, vector<8x128xf32> -> vector<8x128xf32>
    %c0_4 = arith.constant 0 : index
    %c0_5 = arith.constant 0 : index
    %5 = vector.load %arg3[%c0_4, %c0_5] : memref<1x128xf32, #tpu.memory_space<vmem>>, vector<1x128xf32>
    %6 = vector.broadcast %5 : vector<1x128xf32> to vector<8x128xf32>
    %7 = arith.addf %4, %6 : vector<8x128xf32>
    %8 = tpu.iota {dimensions = array<i32: 0>} : vector<8x128xi32>
    %c0_i32 = arith.constant 0 : i32
    %9 = vector.broadcast %c0_i32 : i32 to vector<8x128xi32>
    %10 = arith.cmpi eq, %8, %9 : vector<8x128xi32>
    %c0_6 = arith.constant 0 : index
    %c0_7 = arith.constant 0 : index
    %11 = vector.load %arg4[%c0_6, %c0_7] : memref<1x128xf32, #tpu.memory_space<vmem>>, vector<1x128xf32>
    %c4_i32 = arith.constant 4 : i32
    %12 = vector.broadcast %c4_i32 : i32 to vector<8x128xi32>
    %13 = arith.cmpi sle, %8, %12 : vector<8x128xi32>
    %cst_8 = arith.constant 0.000000e+00 : f32
    %14 = vector.broadcast %cst_8 : f32 to vector<8x128xf32>
    %15 = arith.select %13, %7, %14 : vector<8x128xi1>, vector<8x128xf32>
    %16 = vector.shape_cast %11 : vector<1x128xf32> to vector<1x128xf32>
    %17 = vector.broadcast %16 : vector<1x128xf32> to vector<8x128xf32>
    %18 = arith.select %10, %17, %15 : vector<8x128xi1>, vector<8x128xf32>
    %c0_9 = arith.constant 0 : index
    %c0_10 = arith.constant 0 : index
    %19 = vector.load %arg5[%c0_9, %c0_10] : memref<8x128xf32, #tpu.memory_space<vmem>>, vector<8x128xf32>
    %20 = arith.addf %18, %19 : vector<8x128xf32>
    %c0_11 = arith.constant 0 : index
    %c0_12 = arith.constant 0 : index
    %c0_13 = arith.constant 0 : index
    %21 = vector.load %arg6[%c0_11, %c0_12, %c0_13] : memref<1x8x128xf32, #tpu.memory_space<vmem>>, vector<1x8x128xf32>
    %22 = vector.shape_cast %21 : vector<1x8x128xf32> to vector<8x128xf32>
    %23 = vector.shape_cast %20 : vector<8x128xf32> to vector<1x8x128xf32>
    tpu.vector_store %arg6[%c0_11, %c0_12, %c0_13], %23 {strides = array<i32>} : memref<1x8x128xf32, #tpu.memory_space<vmem>>, vector<1x8x128xf32>,
    return
  }
  func.func @transform_0(%arg0: i32) -> (i32, i32, i32) {
    %c0_i32 = arith.constant 0 : i32
    %c0_i32_0 = arith.constant 0 : i32
    %c0_i32_1 = arith.constant 0 : i32
    return %arg0, %c0_i32, %c0_i32_0 : i32, i32, i32
  }
  func.func @transform_1(%arg0: i32) -> (i32, i32) {
    %c0_i32 = arith.constant 0 : i32
    %c0_i32_0 = arith.constant 0 : i32
    %c0_i32_1 = arith.constant 0 : i32
    return %c0_i32, %c0_i32_0 : i32, i32
  }
  func.func @transform_2(%arg0: i32) -> (i32, i32) {
    %c0_i32 = arith.constant 0 : i32
    %c0_i32_0 = arith.constant 0 : i32
    %c0_i32_1 = arith.constant 0 : i32
    return %c0_i32, %c0_i32_0 : i32, i32
  }
  func.func @transform_3(%arg0: i32) -> (i32, i32) {
    %c0_i32 = arith.constant 0 : i32
    %c0_i32_0 = arith.constant 0 : i32
    %c0_i32_1 = arith.constant 0 : i32
    return %c0_i32, %c0_i32_0 : i32, i32
  }
  func.func @transform_4(%arg0: i32) -> (i32, i32) {
    %c0_i32 = arith.constant 0 : i32
    %c0_i32_0 = arith.constant 0 : i32
    %c0_i32_1 = arith.constant 0 : i32
    return %c0_i32, %c0_i32_0 : i32, i32
  }
  func.func @transform_5(%arg0: i32) -> (i32, i32, i32) {
    %c0_i32 = arith.constant 0 : i32
    %c0_i32_0 = arith.constant 0 : i32
    %c0_i32_1 = arith.constant 0 : i32
    return %arg0, %c0_i32, %c0_i32_0 : i32, i32, i32
  }
}

</mosaic_0001>

<bundles_post_ra>
// kernel: tpu_custom_call.1
= control target key start
LH: loop header
LB: loop body
LE: loop exit
PB: predicated region body
PF: predicated region fallthrough
CT: control target
= control target key end

     0   :  { %10 = vsyncpa [#allocation3], 0  ;;  %s1430_s0 = inlined_call_operand.hbm [shape: f32[2,8,588], index: 0, kind: input, shape index: {}]   ;;  %s1431_s1 = inlined_call_operand.hbm [shape: bf16[588,128], index: 1, kind: input, shape index: {}]   ;;  %s1432_s2 = inlined_call_operand.vmem [shape: f32[1,128], index: 2, kind: input, shape index: {}]   ;;  %s1433_s3 = inlined_call_operand.vmem [shape: f32[1,128], index: 3, kind: input, shape index: {}]   ;;  %s1434_s4 = inlined_call_operand.hbm [shape: f32[8,128], index: 4, kind: input, shape index: {}]   ;;  %s1435_s5 = inlined_call_operand.hbm [shape: f32[2,8,128], index: 5, kind: output, shape index: {}]  }
   0x1   :  { %12 = vsyncpa [#allocation3 + $0x1], 0 }
   0x2   :  { %13 = vsyncpa [#allocation6], 0 }
   0x3   :  { %14 = vsyncpa [#allocation4], 0 }
   0x4   :  { %16 = vsyncpa [#allocation4 + $0x1], 0  ;;  %s1245_s18 = smov 0   ;;  %s1247_s19 = smov 0  }
   0x5   :  { %s1249_s20 = smov 0   ;;  %s1251_s21 = smov 0  }
   0x6 LB: > { %s1266_s22 = sadd.s32 4294967295, %s1205_s21   ;;  %s828_s23 = sadd.s32 4294967294, %s1205_s21   ;;  %s1205_s21 = sphi %s1251_s21, %s1457_s21   ;;  %s1201_s20 = sphi %s1249_s20, %s1456_s20   ;;  %s1197_s19 = sphi %s1247_s19, %s1455_s19   ;;  %s1193_s18 = sphi %s1245_s18, %s1454_s18  }
   0x7   : > { %p42_p0 = scmp.ne.s32.totalorder %s1197_s19, %s1193_s18  ;;  %p1436_p1 = scmp.eq.s32.totalorder %s1266_s22, 0 }
   0x8   : > { %p156_p3 = scmp.eq.s32.totalorder %s828_s23, 1  ;;  %p829_p5 = scmp.ge.s32.totalorder %s1205_s21, 1 }
   0x9   : > { %p1275_p4 = por %p1436_p1, %p42_p0  ;;  %p163_p7 = scmp.lt.s32.totalorder %s1205_s21, 3 }
   0xa   : > { %p1280_p6 = por %p156_p3, %p42_p0  ;;  %s1207_s27 = smov [#allocation5]  }
   0xb   : > { %s1440_s24 = scalar_select %p1275_p4, 1, 0 }
   0xc   : > { %s1441_s25 = scalar_select %p1280_p6, 1, 0 }
   0xd   : > { %p1285_p8 = pnand %p829_p5, %p163_p7  ;;  %s175_s28 = sshll.u32 %s1207_s27, 4  ;;  %s176_s28 = int_to_ptr.vmem [resolvable:$true] %s175_s28 }
   0xe   : > { %s1208_s30 = smov [#allocation7]   ;;  %s1068_s7 = scalar_lea.vmem %s176_s28, 4736 }
   0xf   : > { %s1442_s26 = scalar_select %p1285_p8, 1, 0 }
  0x10   : > { %p961_p9 = pneg %p1285_p8  ;;  %s195_s6 = sshll.u32 %s1208_s30, 4  ;;  %s196_s6 = int_to_ptr.vmem [resolvable:$true] %s195_s6 }
  0x11   : > { %p1069_p13 = scmp.ne.s32.totalorder %s176_s28, %s1068_s7  ;;  %p1076_p5 = scmp.lt.s32.totalorder %s176_s28, %s176_s28 }
  0x12   : > { %p1294_p11 = pnand %p961_p9, %p1436_p1  ;;  %p1077_p7 = scmp.lt.s32.totalorder %s1068_s7, %s1068_s7 }
  0x14   : > { %p1059_p12 = pneg %p1294_p11  ;;  %p1078_p10 = por %p1077_p7, %p1076_p5 }
  0x16   : > { %p1071_p0 = pnand %p1069_p13, %p1059_p12 }
  0x18   : > { %p1072_p3 = pneg %p1071_p0 }
  0x1a   : > { %p1079_p9 = pnand %p1078_p10, %p1072_p3 }
  0x1c   : > { %1082 = shalt.err (!%p1079_p9)
}
  0x1d   : > { %s1209_s8 = smov 64   ;;  %s1210_s9 = smov 4  }
  0x1e   : > { %964 = dma.hbm_to_vmem [thread:$0]  (!%p1294_p11), %s1431_s1, 4736, %s176_s28, [#allocation6], %s1209_s8, %s1209_s8, %s1210_s9  }
  0x1f   : > { %s1094_s12 = scalar_lea.vmem %s196_s6, 128  ;;  %p1102_p2 = scmp.lt.s32.totalorder %s196_s6, %s196_s6 }
  0x20   : > { %p1095_p1 = scmp.ne.s32.totalorder %s196_s6, %s1094_s12  ;;  %p1103_p6 = scmp.lt.s32.totalorder %s1094_s12, %s1094_s12 }
  0x22   : > { %p1097_p13 = pnand %p1095_p1, %p1059_p12  ;;  %p1104_p5 = por %p1103_p6, %p1102_p2 }
  0x24   : > { %p1098_p0 = pneg %p1097_p13 }
  0x26   : > { %p1105_p10 = pnand %p1104_p5, %p1098_p0 }
  0x28   : > { %1108 = shalt.err (!%p1105_p10)
}
  0x29   : > { %967 = dma.hbm_to_vmem [thread:$0]  (!%p1294_p11), %s1434_s4, 128, %s196_s6, [#allocation6]  }
  0x2a   : > { %s1317_s15 = sadd.s32 1, %s1205_s21   ;;  %s29_s16 = sadd.s32 1, %s1201_s20 }
  0x2b   : > { %s26_s17 = ssub.s32 %s1205_s21, %s1317_s15  ;;  %p36_p1 = scmp.ne.s32.totalorder %s1201_s20, %s1197_s19 }
  0x2c   : > { %p27_p2 = scmp.eq.s32.totalorder %s26_s17, 0  ;;  %p37_p6 = scmp.eq.s32.totalorder %s1205_s21, 0 }
  0x2d   : > { %p1444_p12 = scmp.eq.s32.totalorder %s1266_s22, 1  ;;  %p978_p7 = scmp.lt.s32.totalorder %s1205_s21, 2 }
  0x2e   : > { %s1333_s27 = scalar_select %p27_p2, %s1201_s20, %s29_s16  }
  0x2f   : > { %p1327_p3 = por %p1444_p12, %p36_p1  ;;  %p38_p9 = por %p37_p6, %p36_p1 }
  0x30   : > { %s206_s28 = sand.u32 1, %s1201_s20   ;;  %s947_s30 = smul.u32 640, %s1205_s21 }
  0x31   : > { %s1445_s23 = scalar_select %p1327_p3, 1, 0 }
  0x32   : > { %s946_s29 = smul.u32 40, %s206_s28  ;;  %p1337_p11 = pnand %p978_p7, %p38_p9 }
  0x33   : > { %s1344_s9 = scalar_lea.hbm %s1430_s0, %s947_s30  ;;  %s207_s12 = scalar_lea.sflag [#allocation3], %s206_s28 }
  0x34   : > { %s210_s10 = scalar_lea.vmem [#allocation2], %s946_s29  ;;  %s1109_s13 = scalar_lea.hbm %s1344_s9, 640 }
  0x35   : > { %s218_s11 = sshll.u32 %s210_s10, 4  ;;  %p1110_p13 = scmp.ne.s32.totalorder %s1344_s9, %s1109_s13  ;;  %s219_s11 = int_to_ptr.vmem [resolvable:$true] %s218_s11 }
  0x36   : > { %p1111_p0 = pneg %p1337_p11  ;;  %s1114_s17 = scalar_lea.hbm %s1430_s0, 1280 }
  0x37   : > { %p1115_p1 = scmp.lt.s32.totalorder %s1344_s9, %s1430_s0  ;;  %p1116_p2 = scmp.lt.s32.totalorder %s1114_s17, %s1109_s13 }
  0x38   : > { %p1112_p5 = pnand %p1111_p0, %p1110_p13 }
  0x39   : > { %p1117_p6 = por %p1116_p2, %p1115_p1 }
  0x3a   : > { %p1113_p10 = pneg %p1112_p5 }
  0x3c   : > { %p1118_p12 = pnand %p1117_p6, %p1113_p10 }
  0x3e   : > { %1121 = shalt.err (!%p1118_p12)
}
  0x3f   : > { %s1122_s29 = scalar_lea.vmem %s219_s11, 640  ;;  %s1211_s28 = smov [#allocation2]  }
  0x40   : > { %p1123_p7 = scmp.ne.s32.totalorder %s219_s11, %s1122_s29  ;;  %s1127_s8 = sshll.u32 %s1211_s28, 4  ;;  %s1128_s8 = int_to_ptr.vmem [resolvable:$false] %s1127_s8 }
  0x41   : > { %s1129_s10 = scalar_lea.vmem %s1128_s8, 1280  ;;  %p1130_p13 = scmp.lt.s32.totalorder %s219_s11, %s1128_s8 }
  0x42   : > { %p1125_p9 = pnand %p1123_p7, %p1111_p0  ;;  %p1131_p5 = scmp.lt.s32.totalorder %s1129_s10, %s1122_s29 }
  0x44   : > { %p1126_p3 = pneg %p1125_p9  ;;  %p1132_p4 = por %p1131_p5, %p1130_p13 }
  0x46   : > { %p1133_p8 = pnand %p1132_p4, %p1126_p3 }
  0x48   : > { %1136 = shalt.err (!%p1133_p8)
}
  0x49   : > { %971 = dma.hbm_to_vmem [thread:$0]  (!%p1337_p11), %s1344_s9, 640, %s219_s11, %s207_s12  }
  0x4a   : > { %p1447_p10 = scmp.ne.s32.totalorder %s1442_s26, 0 }
  0x4b   : > { %s1363_s13 = sand.u32 (!%p1447_p10), 1, %s1197_s19   ;;  %p1448_p0 = scmp.ne.s32.totalorder (!%p1447_p10), %s1440_s24, 0 }
  0x4c   : > { %227 = sbr.rel (%p1447_p10) target bundleno = 350 (0x15e), region = 40  ;;  %s230_s16 = scalar_lea.sflag (!%p1447_p10), [#allocation3], %s1363_s13 }
  0x4d   : > { %s948_s14 = smul.u32 (!%p1447_p10), 40, %s1363_s13 }
  0x4f   : > { %s1367_s17 = scalar_lea.vmem (!%p1447_p10), [#allocation2], %s948_s14 }
  0x51   : > { %1180 = dma.done.wait (%p1448_p0), %s230_s16, 640  }
  0x52   : > { %1182 = vsyncadd (%p1448_p0), %s230_s16, 4294966656  ;;  %p1449_p4 = scmp.eq.s32.totalorder %s1266_s22, 0 }
  0x54   : > { %1184 = dma.done.wait (%p1449_p4), [#allocation6], 4864   ;;  %p1450_p8 = pmov %p1449_p4 }
  0x55   : > { %v1020_v0 = vld [vmem:[#allocation5 + $0x78] sm:$0xff]   ;;  %v1024_v4 = vld [vmem:[#allocation5 + $0x70] sm:$0xff]   ;;  %v1028_v8 = vld [vmem:[#allocation5 + $0x68] sm:$0xff]   ;;  %v1212_v35 = vmov 0.0   ;;  %vm585_vm0 = vcmask 1045504   ;;  %vm1213_vm1 = vmmov 0   ;;  %v709_v59 = vlaneseq }
  0x56   : > { %1186 = vsyncadd (%p1450_p8), [#allocation6], 4294962432  ;;  %v1021_v1 = vld [vmem:[#allocation5 + $0x38] sm:$0xff]   ;;  %882 = vmatprep.subr.bf16.mxu0 %v1020_v0  ;;  %v1025_v5 = vld [vmem:[#allocation5 + $0x30] sm:$0xff]   ;;  %vm581_vm2 = vcmask 621568   ;;  %s837_s6 = sshll.u32 %s1363_s13, 3 }
  0x57   : > { %v1022_v2 = vld [vmem:[#allocation5 + $0xf8] sm:$0xff]   ;;  %883 = vmatpush3.bf16.msra.mxu0 %v1021_v1  ;;  %v1026_v6 = vld [vmem:[#allocation5 + $0xf0] sm:$0xff]   ;;  %v1029_v9 = vld [vmem:[#allocation5 + $0x28] sm:$0xff]   ;;  %v710_v62 = vshrl.u32 %v709_v59, 7  ;;  %s879_s12 = sshll.u32 %s1266_s22, 7  ;;  %s267_s7 = scalar_lea.vmem [#allocation8], %s837_s6 }
  0x58   : > { %v1023_v3 = vld [vmem:[#allocation5 + $0xb8] sm:$0xff]   ;;  %904 = vmatprep.subr.bf16.mxu1 %v1022_v2  ;;  %884 = vmatprep.subr.bf16.mxu0 %v1024_v4  ;;  %v1027_v7 = vld [vmem:[#allocation5 + $0xb0] sm:$0xff]   ;;  %v1030_v10 = vld [vmem:[#allocation5 + $0xe8] sm:$0xff]   ;;  %s739_s30 = sshll.u32 %s267_s7, 4  ;;  %s1393_s8 = scalar_lea.hbm %s1435_s5, %s879_s12  ;;  %s740_s30 = int_to_ptr.vmem [resolvable:$true] %s739_s30 }
  0x59   : > { %905 = vmatpush3.bf16.msra.mxu1 %v1023_v3  ;;  %v1031_v11 = vld [vmem:[#allocation5 + $0xa8] sm:$0xff]   ;;  %v1032_v12 = vld [vmem:[#allocation5 + $0x60] sm:$0xff]   ;;  %v1036_v16 = vld [vmem:[#allocation5 + $0x58] sm:$0xff]   ;;  %vm713_vm3 = vcmp.le.s32.totalorder %v710_v62, 4  ;;  %vm711_vm4 = vcmp.eq.s32.totalorder %v710_v62, 0  ;;  %s726_s10 = scalar_lea.sflag [#allocation4], %s1363_s13 }
  0x5a   : > { %906 = vmatprep.subr.bf16.mxu1 %v1026_v6  ;;  %v1033_v13 = vld [vmem:[#allocation5 + $0x20] sm:$0xff]   ;;  %v1037_v17 = vld [vmem:[#allocation5 + $0x18] sm:$0xff]   ;;  %v1040_v20 = vld [vmem:[#allocation5 + $0x50] sm:$0xff]   ;;  %s1137_s14 = scalar_lea.vmem %s740_s30, 128  ;;  %p1451_p11 = scmp.ne.s32.totalorder %s1445_s23, 0 }
  0x5b   : > { %885 = vmatpush3.bf16.msra.mxu0 %v1025_v5  ;;  %v1034_v14 = vld [vmem:[#allocation5 + $0xe0] sm:$0xff]   ;;  %v1038_v18 = vld [vmem:[#allocation5 + $0xd8] sm:$0xff]   ;;  %v1041_v21 = vld [vmem:[#allocation5 + $0x10] sm:$0xff]   ;;  %p1138_p3 = scmp.ne.s32.totalorder %s740_s30, %s1137_s14  ;;  %s1214_s22 = smov [#allocation8]  }
  0x5c   : > { %886 = vmatprep.subr.bf16.mxu0 %v1028_v8  ;;  %v1035_v15 = vld [vmem:[#allocation5 + $0xa0] sm:$0xff]   ;;  %v1039_v19 = vld [vmem:[#allocation5 + $0x98] sm:$0xff]   ;;  %v1042_v22 = vld [vmem:[#allocation5 + $0xd0] sm:$0xff]   ;;  %s1141_s16 = sshll.u32 %s1214_s22, 4  ;;  %s1142_s16 = int_to_ptr.vmem [resolvable:$false] %s1141_s16 }
  0x5d   : > { %907 = vmatpush3.bf16.msra.mxu1 %v1027_v7  ;;  %v1043_v23 = vld [vmem:[#allocation5 + $0x90] sm:$0xff]   ;;  %v1044_v24 = vld [vmem:[#allocation5 + $0x48] sm:$0xff]   ;;  %v1048_v28 = vld [vmem:[#allocation5 + $0x40] sm:$0xff]   ;;  %p1139_p1 = pnand %p1138_p3, %p1451_p11  ;;  %p1144_p6 = scmp.lt.s32.totalorder %s740_s30, %s1142_s16 }
  0x5e   : > { %908 = vmatprep.subr.bf16.mxu1 %v1030_v10  ;;  %v1045_v25 = vld [vmem:[#allocation5 + $0x8] sm:$0xff]   ;;  %v1049_v29 = vld [vmem:[#allocation5] sm:$0xff]   ;;  %v269_v34 = vld [vmem:[%s1367_s17] sm:$0xff] }
  0x5f   : > { %887 = vmatpush3.bf16.msra.mxu0 %v1029_v9  ;;  %v1046_v26 = vld [vmem:[#allocation5 + $0xc8] sm:$0xff]   ;;  %v1050_v30 = vld [vmem:[#allocation5 + $0xc0] sm:$0xff]   ;;  %v274_v37 = vpack.c.bf16 %v269_v34, %v269_v34  ;;  %v1053_v43 = vld [vmem:[#allocation5 + $0x118] sm:$0xff]   ;;  %p1140_p2 = pneg %p1139_p1 }
  0x60   : > { %888 = vmatprep.subr.bf16.mxu0 %v1032_v12  ;;  %v1047_v27 = vld [vmem:[#allocation5 + $0x88] sm:$0xff]   ;;  %v270_v31 = vld [vmem:[%s1367_s17 + $0x8] sm:$0xff]  ;;  %v1054_v44 = vld [vmem:[#allocation5 + $0x110] sm:$0xff]  }
  0x61   : > { %909 = vmatpush3.bf16.msra.mxu1 %v1031_v11  ;;  %v275_v32 = vpack.c.bf16 %v270_v31, %v270_v31  ;;  %v1051_v33 = vld [vmem:[#allocation5 + $0x80] sm:$0xff]   ;;  %v272_v36 = vld [vmem:[%s1367_s17 + $0x18] sm:$0xff]  ;;  %v273_v47 = vld [vmem:[%s1367_s17 + $0x20] sm:$0xff] }
  0x62   : > { %910 = vmatprep.subr.bf16.mxu1 %v1034_v14  ;;  %v277_v38 = vpack.c.bf16 %v272_v36, %v272_v36  ;;  %v1052_v39 = vld [vmem:[#allocation5 + $0x120] sm:$0x3f]   ;;  %v1055_v45 = vld [vmem:[#allocation5 + $0x108] sm:$0xff]   ;;  %v278_v48 = vpack.c.bf16 %v273_v47, %v273_v47  ;;  %v838_v58 = vld [vmem:[%s1432_s2] ss:$0 sm:$0xff] }
  0x63   : > { %889 = vmatpush3.bf16.msra.mxu0 %v1033_v13  ;;  %621 = vmatprep.mubr.bf16.mxu0 %v275_v32  ;;  %v271_v40 = vld [vmem:[%s1367_s17 + $0x10] sm:$0xff]  ;;  %v587_v41 = vsel %vm585_vm0, %v1052_v39, 0  ;;  %v877_v2 = vld [vmem:[%s1433_s3] ss:$0 sm:$0xff]  ;;  %s1143_s17 = scalar_lea.vmem %s1142_s16, 256 }
  0x64   : > { %890 = vmatprep.subr.bf16.mxu0 %v1036_v16  ;;  %661 = vmatprep.mubr.bf16.mxu1 %v277_v38  ;;  %v276_v42 = vpack.c.bf16 %v271_v40, %v271_v40  ;;  %v1056_v46 = vld [vmem:[#allocation5 + $0x100] sm:$0xff]   ;;  %v722_v3 = vld [vmem:[#allocation7] sm:$0xff]  ;;  %p1145_p12 = scmp.lt.s32.totalorder %s1143_s17, %s1137_s14 }
  0x65   : > { %911 = vmatpush3.bf16.msra.mxu1 %v1035_v15 }
  0x66   : > { %912 = vmatprep.subr.bf16.mxu1 %v1038_v18  ;;  %p1146_p7 = por %p1145_p12, %p1144_p6 }
  0x67   : > { %891 = vmatpush3.bf16.msra.mxu0 %v1037_v17 }
  0x68   : > { %892 = vmatprep.subr.bf16.mxu0 %v1040_v20  ;;  %p1147_p9 = pnand %p1146_p7, %p1140_p2 }
  0x69   : > { %913 = vmatpush3.bf16.msra.mxu1 %v1039_v19 }
  0x6a   : > { %914 = vmatprep.subr.bf16.mxu1 %v1042_v22 }
  0x6b   : > { %893 = vmatpush3.bf16.msra.mxu0 %v1041_v21 }
  0x6c   : > { %894 = vmatprep.subr.bf16.mxu0 %v1044_v24 }
  0x6d   : > { %915 = vmatpush3.bf16.msra.mxu1 %v1043_v23 }
  0x6e   : > { %916 = vmatprep.subr.bf16.mxu1 %v1046_v26 }
  0x6f   : > { %895 = vmatpush3.bf16.msra.mxu0 %v1045_v25 }
  0x70   : > { %896 = vmatprep.subr.bf16.mxu0 %v1048_v28 }
  0x71   : > { %917 = vmatpush3.bf16.msra.mxu1 %v1047_v27 }
  0x72   : > { %918 = vmatprep.subr.bf16.mxu1 %v1050_v30 }
  0x73   : > { %897 = vmatpush3.bf16.msra.mxu0 %v1049_v29 }
  0x74   : > { %932 = vmatprep.subr.bf16.mxu0 %v1212_v35 }
  0x75   : > { %919 = vmatpush3.bf16.msra.mxu1 %v1051_v33 }
  0x76   : > { %622 = vmatmul.mubr.bf16.vlgmr.msra.gmra.mxu0 %v274_v37 }
  0x77   : > { %933 = vmatpush3.bf16.msra.mxu0 %v587_v41  ;;  %942 = vmatprep.mubr.msk.bf16.mxu0 %vm1213_vm1, %v1212_v35 }
  0x78   : > { %662 = vmatmul.mubr.bf16.vlgmr.msra.gmra.mxu1 %v276_v42  ;;  %934 = vmatprep.subr.bf16.mxu0 %v1212_v35 }
  0x7b   : > { %935 = vmatpush3.bf16.msra.mxu0 %v1053_v43 }
  0x7c   : > { %936 = vmatprep.subr.bf16.mxu0 %v1212_v35 }
  0x7f   : > { %937 = vmatpush3.bf16.msra.mxu0 %v1054_v44 }
  0x80   : > { %938 = vmatprep.subr.bf16.mxu0 %v1212_v35 }
  0x83   : > { %939 = vmatpush3.bf16.msra.mxu0 %v1055_v45 }
  0x84   : > { %940 = vmatprep.subr.bf16.mxu0 %v1212_v35 }
  0x87   : > { %941 = vmatpush3.bf16.msra.mxu0 %v1056_v46 }
  0x8a   : > { %943 = vmatmul.mubr.msk.bf16.vlgmr.msra.gmra.mxu0 %vm581_vm2, %v278_v48 }
 0x136   : > { %v898_v49 = vpop.f32.mrf.mxu0 }
 0x138   : > { %v899_v50 = vpop.f32.mrf.mxu0  ;;  %v920_v51 = vpop.f32.mrf.mxu1 }
 0x139   : > { %v900_v57 = vadd.f32 %v899_v50, %v898_v49 }
 0x13a   : > { %v901_v52 = vpop.f32.mrf.mxu0  ;;  %v921_v53 = vpop.f32.mrf.mxu1 }
 0x13b   : > { %v624_v60 = vadd.f32 %v900_v57, %v838_v58  ;;  %v922_v61 = vadd.f32 %v921_v53, %v920_v51 }
 0x13c   : > { %v902_v54 = vpop.f32.mrf.mxu0  ;;  %v923_v55 = vpop.f32.mrf.mxu1 }
 0x13d   : > { %v664_v63 = vadd.f32 %v922_v61, %v624_v60 }
 0x13e   : > { %v924_v56 = vpop.f32.mrf.mxu1 }
 0x14a   : > { %v703_v0 = vpop.f32.mrf.mxu0 }
 0x14b   : > { %v704_v1 = vadd.f32 %v703_v0, %v664_v63 }
 0x14c   : > { %v944_v4 = vpop.f32.mrf.mxu0 }
 0x14d   : > { %v714_v5 = vsel %vm713_vm3, %v704_v1, 0.0 }
 0x14e   : > { %v721_v6 = vsel %vm711_vm4, %v877_v2, %v714_v5  ;;  %v706_v7 = vpop.f32.mrf.mxu0 }
 0x14f   : > { %v723_v8 = vadd.f32 %v722_v3, %v721_v6 }
 0x150   : > { %v945_v9 = vpop.f32.mrf.mxu0 }
 0x151   : > { %724 = vst [vmem:[%s267_s7] sm:$0xff] %v723_v8 }
 0x152   : > { %1150 = shalt.err (!%p1147_p9)
}
 0x153   : > { %s1151_s24 = scalar_lea.hbm %s1393_s8, 128  ;;  %s1155_s6 = scalar_lea.hbm %s1435_s5, 256 }
 0x154   : > { %p1152_p13 = scmp.ne.s32.totalorder %s1393_s8, %s1151_s24  ;;  %p1156_p0 = scmp.lt.s32.totalorder %s1393_s8, %s1435_s5 }
 0x155   : > { %p1157_p4 = scmp.lt.s32.totalorder %s1155_s6, %s1151_s24 }
 0x156   : > { %p1153_p5 = pnand %p1152_p13, %p1451_p11 }
 0x157   : > { %p1158_p8 = por %p1157_p4, %p1156_p0 }
 0x158   : > { %p1154_p10 = pneg %p1153_p5 }
 0x15a   : > { %p1159_p3 = pnand %p1158_p8, %p1154_p10 }
 0x15c   : > { %1162 = shalt.err (!%p1159_p3)
}
 0x15d   : > { %959 = dma.vmem_to_hbm [thread:$0]  (%p1451_p11), %s740_s30, 128, %s1393_s8, %s726_s10  }
 0x15e PF: > { %s751_s12 = sand.u32 1, %s1193_s18   ;;  %p1452_p1 = scmp.ne.s32.totalorder %s1441_s25, 0 }
 0x15f   : > { %p1453_p2 = scmp.ge.s32.totalorder %s1205_s21, 2  ;;  %s752_s7 = scalar_lea.sflag [#allocation4], %s751_s12 }
 0x161   : > { %p973_p6 = pnand %p1453_p2, %p1452_p1 }
 0x163   : > { %p974_p12 = pneg %p973_p6 }
 0x165   : > { %1188 = dma.done.wait (%p974_p12), %s752_s7, 128  }
 0x166   : > { %1190 = vsyncadd (%p974_p12), %s752_s7, 4294967168  ;;  %p19_p7 = scmp.ge.s32.totalorder %s1317_s15, 4   ;;  %s1454_s18 = smov %s1197_s19 }
 0x167   : > { %s1455_s19 = smov %s1201_s20  ;;  %s1456_s20 = smov %s1333_s27 }
 0x168   : > { %s1457_s21 = smov %s1317_s15  ;;  %21 = sbr.rel (!%p19_p7) target bundleno = 6 (0x6), region = 93 }
 0x16d   :  { %757 = vsyncpa [#allocation3], 1 }
 0x16e   :  { %759 = vsyncpa [#allocation3 + $0x1], 1 }
 0x16f   :  { %760 = vsyncpa [#allocation6], 1 }
 0x170   :  { %761 = vsyncpa [#allocation4], 1 }
 0x171   :  { %763 = vsyncpa [#allocation4 + $0x1], 1 }

</bundles_post_ra>
